<compile_context>
chip_gen: v6e
topology: v6e:2x2x1
jax: 0.10.0
libtpu: 0.0.40
codegen_flags: <defaults>
</compile_context>

<pallas_src>
import functools

import jax
import jax.numpy as jnp
from jax import lax
from jax.experimental import pallas as pl
from jax.experimental.pallas import tpu as pltpu


def _round_up(x, m):
    return ((x + m - 1) // m) * m


def _supports_bf16_eup():
    # v5e (and older) have no bf16 VPU/EUP path -> bf16 tanh only adds casts there.
    try:
        kind = jax.devices()[0].device_kind.lower()
    except Exception:
        return False
    return not any(tag in kind for tag in ("v2", "v3", "v4", "v5"))


def value_fn_kernel(x_ref, w1_ref, b1_ref, w2_ref, b2_ref, out_ref, *, bf16_act):
    # x_ref : (TB, D) f32   (untransposed; cast + transposed-contract in-kernel)
    # w1_ref: (H, D)  bf16  (torch layout, VMEM-resident)
    # b1_ref: (H, 1)  f32   w2_ref: (H, 1) f32   b2_ref: (1, 1) f32
    # out_ref: (1, TB) f32  (batch on the lane axis -> lane-dense stores)
    x16 = x_ref[...].astype(jnp.bfloat16)
    # layer 1: contract D of both operands -> (H, TB); MXU, f32 accumulation
    h = lax.dot_general(
        w1_ref[...], x16,
        dimension_numbers=(((1,), (1,)), ((), ())),
        preferred_element_type=jnp.float32,
    )
    h = h + b1_ref[...]                                      # (H, TB) f32
    if bf16_act:
        # v6e/v7x: bf16 EUP tanh ~2x rate; multiply in bf16, accumulate in f32.
        t = jnp.tanh(h.astype(jnp.bfloat16))
        prod = (t * w2_ref[...].astype(jnp.bfloat16)).astype(jnp.float32)
    else:
        t = jnp.tanh(h)
        prod = t * w2_ref[...]
    # layer 2: sublane reduce (XLU) -- avoids an N=1 MXU matmul, overlaps layer 1
    y = jnp.sum(prod, axis=0, keepdims=True)                 # (1, TB) f32
    out_ref[...] = (y + b2_ref[...]).astype(out_ref.dtype)


def prepare_value_params(w1, b1, w2, b2, matmul_dtype=jnp.bfloat16):
    """One-time weight prep (hoisted out of the per-call path).
       w1: (H, D), b1: (H,), w2: (1, H), b2: (1,)  -- torch nn.Linear layouts."""
    H, D = w1.shape
    w1_k = jnp.asarray(w1, matmul_dtype)                     # (H, D) used as-is
    b1_k = jnp.asarray(b1, jnp.float32).reshape(H, 1)        # column: broadcasts over lanes
    w2_k = jnp.asarray(w2, jnp.float32).reshape(H, 1)        # (1, H) -> (H, 1) column
    b2_k = jnp.asarray(b2, jnp.float32).reshape(1, 1)
    return (w1_k, b1_k, w2_k, b2_k)


def value_function_apx(observation, params, *, batch_tile=2048):
    """observation: (B, D) (or (D,)); returns squeezed values like torch.squeeze."""
    w1_k, b1_k, w2_k, b2_k = params
    H, D = w1_k.shape

    obs = jnp.asarray(observation, jnp.float32)
    vector_input = obs.ndim == 1
    if vector_input:
        obs = obs[None, :]
    B = obs.shape[0]

    # Lane-dense batch tile (multiple of 128).  For B > 128, cap TB so there are
    # >= 2 grid steps (v7x megacore uses both TensorCores).  No host-side pad or
    # transpose: Pallas pads OOB reads of the ragged last tile and masks OOB
    # writes; padded output lanes are sliced off below and cannot contaminate
    # valid lanes (the reduction is over H, per-lane).
    if B <= 128:
        TB = 128
    else:
        TB = min(batch_tile, _round_up((B + 1) // 2, 128))
    num_tiles = pl.cdiv(B, TB)

    mm_bytes = jnp.dtype(w1_k.dtype).itemsize               # bf16 matmul operands
    cost = pl.CostEstimate(
        flops=2 * num_tiles * TB * D * H + 4 * num_tiles * TB * H,
        transcendentals=num_tiles * TB * H,
        bytes_accessed=B * D * 4 + H * D * mm_bytes + (2 * H + 1) * 4 + B * 4,
    )

    # Tight VMEM budget: resident weights + double-buffered x/out tiles + headroom.
    vmem_need = (H * D * mm_bytes + (2 * H + 1) * 4
                 + 2 * TB * D * 4 + 2 * TB * 4)
    vmem_limit = int(min(max(2 * vmem_need + (1 << 20), 4 << 20), 32 << 20))

    bf16_act = (H >= 8 * D) and _supports_bf16_eup()
    kernel = functools.partial(value_fn_kernel, bf16_act=bf16_act)

    out = pl.pallas_call(
        kernel,
        out_shape=jax.ShapeDtypeStruct((1, B), jnp.float32),
        grid=(num_tiles,),
        in_specs=[
            pl.BlockSpec((TB, D), lambda i: (i, 0)),         # x tile: pipelined over batch
            pl.BlockSpec((H, D), lambda i: (0, 0)),          # W1: VMEM-resident
            pl.BlockSpec((H, 1), lambda i: (0, 0)),          # b1
            pl.BlockSpec((H, 1), lambda i: (0, 0)),          # w2
            pl.BlockSpec((1, 1), lambda i: (0, 0)),          # b2
        ],
        out_specs=pl.BlockSpec((1, TB), lambda i: (0, i)),   # lane-dense output tile
        compiler_params=pltpu.CompilerParams(
            dimension_semantics=("parallel",),               # megacore sharding on v7x
            vmem_limit_bytes=vmem_limit,
        ),
        cost_estimate=cost,
    )(obs, w1_k, b1_k, w2_k, b2_k)

    values = out[0]                                          # (B,)
    if vector_input:
        return values[0]
    return jnp.squeeze(values)                               # torch.squeeze semantics


def init_params(key, input_dim, hidden_dim):
    """Deterministic init mimicking nn.Linear default (uniform +-1/sqrt(fan_in))."""
    k1, k2, k3, k4 = jax.random.split(key, 4)
    lim1 = 1.0 / (input_dim ** 0.5)
    lim2 = 1.0 / (hidden_dim ** 0.5)
    w1 = jax.random.uniform(k1, (hidden_dim, input_dim), jnp.float32, -lim1, lim1)
    b1 = jax.random.uniform(k2, (hidden_dim,), jnp.float32, -lim1, lim1)
    w2 = jax.random.uniform(k3, (1, hidden_dim), jnp.float32, -lim2, lim2)
    b2 = jax.random.uniform(k4, (1,), jnp.float32, -lim2, lim2)
    return w1, b1, w2, b2


if __name__ == "__main__":
    key = jax.random.PRNGKey(0)
    k_obs, k_params, k_obs2, k_params2 = jax.random.split(key, 4)

    # --- Test 1: small shapes (single tile, f32 activation path) ---------------
    batch, input_dim, hidden_dim = 8, 16, 32
    observation = jax.random.normal(k_obs, (batch, input_dim), jnp.float32)
    w1, b1, w2, b2 = init_params(k_params, input_dim, hidden_dim)
    params = prepare_value_params(w1, b1, w2, b2)            # one-time weight prep

    out = jax.block_until_ready(value_function_apx(observation, params))
    ref = jnp.squeeze(jnp.tanh(observation @ w1.T + b1) @ w2.T + b2)
    assert out.shape == (batch,)
    # bf16 matmul inputs -> loose tolerance vs pure-f32 torch-equivalent math
    assert jnp.allclose(out, ref, atol=2e-2, rtol=2e-2)

    # --- Test 2: ragged multi-tile batch, tall hidden (bf16 tanh on v6e/v7x) ---
    batch2, input_dim2, hidden_dim2 = 300, 16, 256
    observation2 = jax.random.normal(k_obs2, (batch2, input_dim2), jnp.float32)
    w1b, b1b, w2b, b2b = init_params(k_params2, input_dim2, hidden_dim2)
    params2 = prepare_value_params(w1b, b1b, w2b, b2b)

    out2 = jax.block_until_ready(value_function_apx(observation2, params2))
    ref2 = jnp.squeeze(jnp.tanh(observation2 @ w1b.T + b1b) @ w2b.T + b2b)
    assert out2.shape == (batch2,)
    assert jnp.allclose(out2, ref2, atol=5e-2, rtol=5e-2)

    # --- Vector (unbatched) input -> scalar, matching torch.squeeze ------------
    out_vec = jax.block_until_ready(value_function_apx(observation[0], params))
    assert out_vec.shape == ()

    print("KERNEL_OK")
</pallas_src>

<mosaic_0001>
module attributes {stable_mosaic.version = 11 : i64} {
  func.func @value_fn_kernel(%arg0: i32, %arg1: memref<128x16xf32, #tpu.memory_space<vmem>>, %arg2: memref<32x16xbf16, #tpu.memory_space<vmem>>, %arg3: memref<32x1xf32, #tpu.memory_space<vmem>>, %arg4: memref<32x1xf32, #tpu.memory_space<vmem>>, %arg5: memref<1x1xf32, #tpu.memory_space<vmem>>, %arg6: memref<1x128xf32, #tpu.memory_space<vmem>>) attributes {dimension_semantics = [#tpu.dimension_semantics<parallel>], iteration_bounds = array<i64: 1>, scalar_prefetch = 0 : i64, scratch_operands = 0 : i64, tpu.core_type = #tpu.core_type<tc>, window_params = [{transform_indices = @transform_0, window_bounds = array<i64: 128, 16>}, {pipeline_mode = #tpu.pipeline_mode<synchronous>, transform_indices = @transform_1, window_bounds = array<i64: 32, 16>}, {pipeline_mode = #tpu.pipeline_mode<synchronous>, transform_indices = @transform_2, window_bounds = array<i64: 32, 1>}, {pipeline_mode = #tpu.pipeline_mode<synchronous>, transform_indices = @transform_3, window_bounds = array<i64: 32, 1>}, {pipeline_mode = #tpu.pipeline_mode<synchronous>, transform_indices = @transform_4, window_bounds = array<i64: 1, 1>}, {transform_indices = @transform_5, window_bounds = array<i64: 1, 128>}]} {
    %c0 = arith.constant 0 : index
    %c0_0 = arith.constant 0 : index
    %0 = vector.load %arg1[%c0, %c0_0] : memref<128x16xf32, #tpu.memory_space<vmem>>, vector<128x16xf32>
    %1 = arith.truncf %0 : vector<128x16xf32> to vector<128x16xbf16>
    %c0_1 = arith.constant 0 : index
    %c0_2 = arith.constant 0 : index
    %2 = vector.load %arg2[%c0_1, %c0_2] : memref<32x16xbf16, #tpu.memory_space<vmem>>, vector<32x16xbf16>
    %cst = arith.constant dense<0.000000e+00> : vector<32x128xf32>
    %3 = tpu.matmul %2, %1, %cst {dimension_numbers = #tpu.dot_dimension_numbers<[1], [1], [0], [0], [0, 0, 1, 0], [], []>} : vector<32x16xbf16>, vector<128x16xbf16>, vector<32x128xf32> -> vector<32x128xf32>
    %c0_3 = arith.constant 0 : index
    %c0_4 = arith.constant 0 : index
    %4 = vector.load %arg3[%c0_3, %c0_4] : memref<32x1xf32, #tpu.memory_space<vmem>>, vector<32x1xf32>
    %5 = vector.broadcast %4 : vector<32x1xf32> to vector<32x128xf32>
    %6 = arith.addf %3, %5 : vector<32x128xf32>
    %7 = math.tanh %6 : vector<32x128xf32>
    %c0_5 = arith.constant 0 : index
    %c0_6 = arith.constant 0 : index
    %8 = vector.load %arg4[%c0_5, %c0_6] : memref<32x1xf32, #tpu.memory_space<vmem>>, vector<32x1xf32>
    %9 = vector.broadcast %8 : vector<32x1xf32> to vector<32x128xf32>
    %10 = arith.mulf %7, %9 : vector<32x128xf32>
    %cst_7 = arith.constant dense<0.000000e+00> : vector<128xf32>
    %11 = vector.multi_reduction <add>, %10, %cst_7 [0] : vector<32x128xf32> to vector<128xf32>
    %12 = vector.shape_cast %11 : vector<128xf32> to vector<1x128xf32>
    %c0_8 = arith.constant 0 : index
    %c0_9 = arith.constant 0 : index
    %13 = vector.load %arg5[%c0_8, %c0_9] : memref<1x1xf32, #tpu.memory_space<vmem>>, vector<1x1xf32>
    %14 = vector.broadcast %13 : vector<1x1xf32> to vector<1x128xf32>
    %15 = arith.addf %12, %14 : vector<1x128xf32>
    %c0_10 = arith.constant 0 : index
    %c0_11 = arith.constant 0 : index
    %16 = vector.load %arg6[%c0_10, %c0_11] : memref<1x128xf32, #tpu.memory_space<vmem>>, vector<1x128xf32>
    tpu.vector_store %arg6[%c0_10, %c0_11], %15 {strides = array<i32>} : memref<1x128xf32, #tpu.memory_space<vmem>>, vector<1x128xf32>,
    return
  }
  func.func @transform_0(%arg0: i32) -> (i32, i32) {
    %c0_i32 = arith.constant 0 : i32
    %c0_i32_0 = arith.constant 0 : i32
    return %arg0, %c0_i32 : i32, i32
  }
  func.func @transform_1(%arg0: i32) -> (i32, i32) {
    %c0_i32 = arith.constant 0 : i32
    %c0_i32_0 = arith.constant 0 : i32
    %c0_i32_1 = arith.constant 0 : i32
    return %c0_i32, %c0_i32_0 : i32, i32
  }
  func.func @transform_2(%arg0: i32) -> (i32, i32) {
    %c0_i32 = arith.constant 0 : i32
    %c0_i32_0 = arith.constant 0 : i32
    %c0_i32_1 = arith.constant 0 : i32
    return %c0_i32, %c0_i32_0 : i32, i32
  }
  func.func @transform_3(%arg0: i32) -> (i32, i32) {
    %c0_i32 = arith.constant 0 : i32
    %c0_i32_0 = arith.constant 0 : i32
    %c0_i32_1 = arith.constant 0 : i32
    return %c0_i32, %c0_i32_0 : i32, i32
  }
  func.func @transform_4(%arg0: i32) -> (i32, i32) {
    %c0_i32 = arith.constant 0 : i32
    %c0_i32_0 = arith.constant 0 : i32
    %c0_i32_1 = arith.constant 0 : i32
    return %c0_i32, %c0_i32_0 : i32, i32
  }
  func.func @transform_5(%arg0: i32) -> (i32, i32) {
    %c0_i32 = arith.constant 0 : i32
    %c0_i32_0 = arith.constant 0 : i32
    return %c0_i32, %arg0 : i32, i32
  }
}

</mosaic_0001>

<bundles_post_ra>
// kernel: tpu_custom_call.1
= control target key start
LH: loop header
LB: loop body
LE: loop exit
PB: predicated region body
PF: predicated region fallthrough
CT: control target
= control target key end

     0   :  { %s445_s0 = inlined_call_operand.vmem [shape: f32[8,16], index: 0, kind: input, shape index: {}]   ;;  %s446_s1 = inlined_call_operand.vmem [shape: bf16[32,16], index: 1, kind: input, shape index: {}]   ;;  %s447_s2 = inlined_call_operand.vmem [shape: f32[32,1], index: 2, kind: input, shape index: {}]   ;;  %s448_s3 = inlined_call_operand.vmem [shape: f32[32,1], index: 3, kind: input, shape index: {}]   ;;  %s449_s4 = inlined_call_operand.<no memory space> [shape: f32[1,1], index: 4, kind: input, shape index: {}]   ;;  %s450_s5 = inlined_call_operand.hbm [shape: f32[1,8], index: 5, kind: output, shape index: {}]  }
   0x1   :  { %v10_v0 = vstv %s449_s4 }
   0x2   :  { %11 = vst [vmem:[#allocation2] sm:$0x1] %v10_v0 }
   0x3   :  { %v38_v1 = vld [vmem:[%s445_s0 + $0x70] sm:$0xff]  ;;  %v39_v2 = vld [vmem:[%s445_s0 + $0x78] sm:$0xff]  ;;  %vm86_vm0 = vcmask 130048   ;;  %v36_v3 = vld [vmem:[%s445_s0 + $0x60] sm:$0xff]  ;;  %v311_v6 = vmov 0  }
   0x4   :  { %v47_v4 = vpack.c.bf16 %v39_v2, %v38_v1  ;;  %v37_v5 = vld [vmem:[%s445_s0 + $0x68] sm:$0xff]  ;;  %277 = vset.pattern.permute.xlu0 %v311_v6  ;;  %278 = vset.pattern.permute.xlu1 %v311_v6  ;;  %v34_v9 = vld [vmem:[%s445_s0 + $0x50] sm:$0xff]  ;;  %v35_v10 = vld [vmem:[%s445_s0 + $0x58] sm:$0xff] }
   0x5   :  { %v46_v7 = vpack.c.bf16 %v37_v5, %v36_v3  ;;  %v279_v11 = vld [vmem:[%s446_s1] sm:$0xff]   ;;  %v54_v13 = vld [vmem:[%s447_s2 + $0x10] sm:$0xff]  ;;  %v45_v15 = vpack.c.bf16 %v35_v10, %v34_v9  ;;  %v53_v16 = vld [vmem:[%s447_s2 + $0x8] sm:$0xff] }
   0x6   :  { %267 = vmatprep.subr.msk.bf16.mxu0 %vm86_vm0, %v47_v4  ;;  %v115_v8 = vsel %vm86_vm0, %v47_v4, 0  ;;  %v52_v12 = vld [vmem:[%s447_s2] sm:$0xff]  ;;  %263 = vmatprep.mubr.msk.bf16.mxu0 %vm86_vm0, %v279_v11  ;;  %v55_v17 = vld [vmem:[%s447_s2 + $0x18] sm:$0xff] }
   0x7   :  { %248 = vmatpush3.bf16.xpose.msra.mxu0 %v115_v8  ;;  %58 = vperm.xlu0 %277, %v52_v12   ;;  %v112_v14 = vsel %vm86_vm0, %v46_v7, 0 }
   0x8   :  { %268 = vmatprep.subr.msk.bf16.mxu0 %vm86_vm0, %v46_v7  ;;  %68 = vperm.xlu1 %278, %v54_v13  }
   0x9   :  { %12 = vsyncpa [#allocation4], 0  ;;  %v170_v18 = vld [vmem:[%s448_s3] sm:$0xff]  ;;  %v33_v20 = vld [vmem:[%s445_s0 + $0x48] sm:$0xff]  ;;  %v109_v22 = vsel %vm86_vm0, %v45_v15, 0  ;;  %v213_v7 = vlaneseq }
   0xa   :  { %v32_v19 = vld [vmem:[%s445_s0 + $0x40] sm:$0xff]  ;;  %v171_v21 = vld [vmem:[%s448_s3 + $0x8] sm:$0xff]  ;;  %v172_v24 = vld [vmem:[%s448_s3 + $0x10] sm:$0xff] }
   0xb   :  { %63 = vperm.xlu0 %277, %v53_v16   ;;  %v44_v23 = vpack.c.bf16 %v33_v20, %v32_v19  ;;  %v173_v25 = vld [vmem:[%s448_s3 + $0x18] sm:$0xff]  ;;  %v207_v26 = vld [vmem:[#allocation2] sm:$0x1]  ;;  %v30_v27 = vld [vmem:[%s445_s0 + $0x30] sm:$0xff]  ;;  %v214_v10 = vshrl.u32 %v213_v7, 7 }
   0xc   :  { %73 = vperm.xlu1 %278, %v55_v17   ;;  %v31_v28 = vld [vmem:[%s445_s0 + $0x38] sm:$0xff]  ;;  %v28_v31 = vld [vmem:[%s445_s0 + $0x20] sm:$0xff]  ;;  %v29_v32 = vld [vmem:[%s445_s0 + $0x28] sm:$0xff] }
   0xd   :  { %v106_v29 = vsel %vm86_vm0, %v44_v23, 0  ;;  %v43_v30 = vpack.c.bf16 %v31_v28, %v30_v27  ;;  %v42_v34 = vpack.c.bf16 %v29_v32, %v28_v31  ;;  %v26_v35 = vld [vmem:[%s445_s0 + $0x10] sm:$0xff]  ;;  %v27_v36 = vld [vmem:[%s445_s0 + $0x18] sm:$0xff]  ;;  %v24_v39 = vld [vmem:[%s445_s0] sm:$0xff]  ;;  %v215_v13 = vsub.s32 0, %v214_v10 }
   0xe   :  { %v41_v38 = vpack.c.bf16 %v27_v36, %v26_v35  ;;  %v25_v40 = vld [vmem:[%s445_s0 + $0x8] sm:$0xff]  ;;  %s312_s0 = smov [#allocation3]  }
   0xf   :  { %250 = vmatpush3.bf16.xpose.msra.mxu0 %v112_v14  ;;  %176 = vperm.xlu0 %277, %v170_v18   ;;  %v103_v33 = vsel %vm86_vm0, %v43_v30, 0  ;;  %v100_v37 = vsel %vm86_vm0, %v42_v34, 0  ;;  %v40_v42 = vpack.c.bf16 %v25_v40, %v24_v39  ;;  %v280_v44 = vld [vmem:[%s446_s1 + $0x8] sm:$0xff]   ;;  %s225_s1 = sshll.u32 %s312_s0, 4  ;;  %s226_s1 = int_to_ptr.vmem [resolvable:$true] %s225_s1 }
  0x10   :  { %269 = vmatprep.subr.msk.bf16.mxu0 %vm86_vm0, %v45_v15  ;;  %181 = vperm.xlu1 %278, %v171_v21   ;;  %v97_v41 = vsel %vm86_vm0, %v41_v38, 0  ;;  %s289_s18 = scalar_lea.vmem %s226_s1, 16  ;;  %s293_s19 = scalar_lea.vmem %s226_s1, 32 }
  0x11   :  { %v94_v43 = vsel %vm86_vm0, %v40_v42, 0  ;;  %p290_p0 = scmp.ne.s32.totalorder %s226_s1, %s289_s18  ;;  %p294_p1 = scmp.lt.s32.totalorder %s226_s1, %s226_s1 }
  0x12   :  { %p295_p2 = scmp.lt.s32.totalorder %s293_s19, %s289_s18 }
  0x13   :  { %186 = vperm.xlu0 %277, %v172_v24  }
  0x14   :  { %191 = vperm.xlu1 %278, %v173_v25   ;;  %p296_p3 = por %p295_p2, %p294_p1 }
  0x16   :  { %p297_p4 = pnand %p296_p3, %p290_p0 }
  0x17   :  { %252 = vmatpush3.bf16.xpose.msra.mxu0 %v109_v22  ;;  %210 = vperm.xlu0 %277, %v207_v26  }
  0x18   :  { %270 = vmatprep.subr.msk.bf16.mxu0 %vm86_vm0, %v44_v23 }
  0x1f   :  { %254 = vmatpush3.bf16.xpose.msra.mxu0 %v106_v29 }
  0x20   :  { %271 = vmatprep.subr.msk.bf16.mxu0 %vm86_vm0, %v43_v30 }
  0x27   :  { %256 = vmatpush3.bf16.xpose.msra.mxu0 %v103_v33 }
  0x28   :  { %272 = vmatprep.subr.msk.bf16.mxu0 %vm86_vm0, %v42_v34 }
  0x2f   :  { %258 = vmatpush3.bf16.xpose.msra.mxu0 %v100_v37 }
  0x30   :  { %273 = vmatprep.subr.msk.bf16.mxu0 %vm86_vm0, %v41_v38 }
  0x37   :  { %260 = vmatpush3.bf16.xpose.msra.mxu0 %v97_v41 }
  0x38   :  { %274 = vmatprep.subr.msk.bf16.mxu0 %vm86_vm0, %v40_v42 }
  0x3f   :  { %262 = vmatpush3.bf16.xpose.msra.mxu0 %v94_v43 }
  0x46   :  { %264 = vmatmul.mubr.msk.bf16.vlgmr.msra.gmra.mxu0 %vm86_vm0, %v280_v44 }
  0x82   :  { %v59_v45 = vpop.permute.xlu0 %58 }
  0x83   :  { %v69_v46 = vpop.permute.xlu1 %68 }
  0x86   :  { %v64_v52 = vpop.permute.xlu0 %63 }
  0x87   :  { %v74_v53 = vpop.permute.xlu1 %73 }
  0x8a   :  { %v177_v57 = vpop.permute.xlu0 %176 }
  0x8b   :  { %v182_v59 = vpop.permute.xlu1 %181 }
  0x8e   :  { %v187_v1 = vpop.permute.xlu0 %186 }
  0x8f   :  { %v192_v4 = vpop.permute.xlu1 %191 }
  0x92   :  { %v211_v15 = vpop.permute.xlu0 %210 }
  0x93   :  { %v216_v17 = vrot.slane %v211_v15, %v215_v13 }
 0x106   :  { %v265_v47 = vpop.f32.mrf.mxu0 }
 0x107   :  { %v160_v50 = vadd.f32 %v265_v47, %v69_v46 }
 0x108   :  { %v151_v48 = vpop.f32.mrf.mxu0 }
 0x109   :  { %v152_v49 = vadd.f32 %v151_v48, %v59_v45 }
 0x10a   :  { %v266_v51 = vpop.f32.mrf.mxu0 }
 0x10b   :  { %281 = vtanh.f32 %v152_v49  ;;  %v163_v55 = vadd.f32 %v266_v51, %v74_v53 }
 0x10c   :  { %v154_v54 = vpop.f32.mrf.mxu0  ;;  %283 = vtanh.f32 %v160_v50 }
 0x10d   :  { %v155_v56 = vadd.f32 %v154_v54, %v64_v52 }
 0x10f   :  { %285 = vtanh.f32 %v155_v56 }
 0x110   :  { %287 = vtanh.f32 %v163_v55 }
 0x118   :  { %v282_v58 = vpop.eup %281 }
 0x119   :  { %v284_v60 = vpop.eup %283  ;;  %v194_v62 = vmul.f32 %v282_v58, %v177_v57 }
 0x11a   :  { %v196_v2 = vmul.f32 %v284_v60, %v187_v1 }
 0x11c   :  { %v286_v61 = vpop.eup %285 }
 0x11d   :  { %v195_v63 = vmul.f32 %v286_v61, %v182_v59  ;;  %v288_v0 = vpop.eup %287 }
 0x11e   :  { %v197_v5 = vmul.f32 %v288_v0, %v192_v4 }
 0x11f   :  { %v198_v3 = vadd.f32 %v195_v63, %v194_v62 }
 0x121   :  { %v199_v6 = vadd.f32 %v198_v3, %v196_v2 }
 0x123   :  { %v200_v8 = vadd.f32 %v199_v6, %v197_v5 }
 0x125   :  { %v201_v9 = vrot.slane %v200_v8, 4 }
 0x127   :  { %v202_v11 = vadd.f32 %v201_v9, %v200_v8 }
 0x129   :  { %v203_v12 = vrot.slane %v202_v11, 2 }
 0x12b   :  { %v204_v14 = vadd.f32 %v203_v12, %v202_v11 }
 0x12d   :  { %v205_v16 = vrot.slane %v204_v14, 1 }
 0x12f   :  { %v206_v18 = vadd.f32 %v205_v16, %v204_v14 }
 0x131   :  { %v217_v19 = vadd.f32 %v216_v17, %v206_v18 }
 0x133   :  { %218 = vst [vmem:[#allocation3] sm:$0x1] %v217_v19 }
 0x134   :  { %300 = shalt.err (!%p297_p4)
}
 0x135   :  { %228 = dma.vmem_to_hbm [thread:$0]  %s226_s1, 16, %s450_s5, [#allocation4]  }
 0x136   :  { %309 = dma.done.wait [#allocation4], 16  }
 0x137   :  { %310 = vsyncadd [#allocation4], 4294967280 }
 0x138   :  { %232 = vsyncpa [#allocation4], 1 }

</bundles_post_ra>
